<compile_context>
chip_gen: v7x
topology: tpu7x:2x2x1
jax: 0.10.0
libtpu: 0.0.40
codegen_flags: <defaults>
</compile_context>

<pallas_src>
from functools import partial

import jax
import jax.numpy as jnp
from jax import lax
from jax.experimental import pallas as pl
from jax.experimental.pallas import tpu as pltpu

jax.config.update("jax_default_matmul_precision", "highest")


def _tree_sum(vals):
    """Pairwise (tree) sum of a list of equal-shaped arrays (shorter dep chain)."""
    vals = list(vals)
    while len(vals) > 1:
        nxt = [vals[i] + vals[i + 1] for i in range(0, len(vals) - 1, 2)]
        if len(vals) % 2:
            nxt.append(vals[-1])
        vals = nxt
    return vals[0]


def _rnn_fc_kernel(x_ref, h0_ref, p_ref, q_ref, hn_ref, *,
                   seq_len, in_size, hid_size, out_size):
    """h_t = tanh(x_t @ W_ih^T + b_ih + h_{t-1} @ W_hh^T + b_hh);  q = h @ W_fc^T + b_fc."""
    bp = h0_ref.shape[0]                       # padded batch (sublane multiple)
    I, H, O = in_size, hid_size, out_size

    # Unpack the single parameter operand (static slices of a tiny in-register value).
    p = p_ref[...]                                                   # (rows_pad, 128)
    w_ih = p[0:I, 0:H]                                               # (I, H)  = W_ih^T
    b_rnn = p[I + H:I + H + 1, 0:H]                                  # (1, H)  = b_ih + b_hh
    w_fc = p[I + H + 1:I + 2 * H + 1, 0:O]                           # (H, O)  = W_fc^T
    b_fc = p[I + 2 * H + 1:I + 2 * H + 2, 0:O]                       # (1, O)
    # Rows of W_hh^T, hoisted & pre-broadcast to (B_pad, H) once (outside the loop).
    w_hh_rows = [jnp.broadcast_to(p[I + k:I + k + 1, 0:H], (bp, H)) for k in range(H)]

    # (1) Hoisted input projection: ONE MXU matmul + bias for all timesteps.
    pre = (jnp.dot(x_ref[...], w_ih,
                   preferred_element_type=jnp.float32,
                   precision=lax.Precision.HIGHEST)
           + b_rnn)                                                  # (S*B_pad, H)

    # (2) Serial recurrence on the VPU: h carried in registers, statically unrolled.
    #     No per-step MXU fill/pop and no VMEM round-trip on the critical chain.
    h = h0_ref[...]                                                  # (B_pad, H)
    hs = []
    for t in range(seq_len):
        pre_t = pre[t * bp:(t + 1) * bp, :]                          # sublane-aligned view
        prods = [h[:, k:k + 1] * w_hh_rows[k] for k in range(H)]     # broadcast-mul (VPU)
        h = jnp.tanh(pre_t + _tree_sum(prods))
        hs.append(h)
    hn_ref[...] = h

    # (3) Hoisted FC projection: h_t stack lives in vregs, ONE matmul + ONE store.
    h_all = jnp.concatenate(hs, axis=0)                              # (S*B_pad, H)
    q_ref[...] = (jnp.dot(h_all, w_fc,
                          preferred_element_type=jnp.float32,
                          precision=lax.Precision.HIGHEST)
                  + b_fc).astype(q_ref.dtype)


def pack_params(params):
    """Pack all weights/biases into one lane-padded (rows, 128) f32 array.

    Called ONCE per parameter set (hoists transposes / bias folding out of the
    per-call path). Layout (rows):
      [0:I]            w_ih^T   (I, H)
      [I:I+H]          w_hh^T   (H, H)
      [I+H]            b_ih + b_hh      (H,)
      [I+H+1:I+2H+1]   w_fc^T   (H, O)
      [I+2H+1]         b_fc             (O,)
    """
    w_ih, w_hh, b_ih, b_hh, w_fc, b_fc = (
        params["w_ih"], params["w_hh"], params["b_ih"], params["b_hh"],
        params["w_fc"], params["b_fc"],
    )
    H, I = w_ih.shape
    O = w_fc.shape[0]
    rows = I + 2 * H + 2
    rows_pad = ((rows + 7) // 8) * 8
    cols = ((max(H, O) + 127) // 128) * 128
    p = jnp.zeros((rows_pad, cols), jnp.float32)
    p = p.at[0:I, 0:H].set(w_ih.T.astype(jnp.float32))
    p = p.at[I:I + H, 0:H].set(w_hh.T.astype(jnp.float32))
    p = p.at[I + H, 0:H].set((b_ih + b_hh).astype(jnp.float32))
    p = p.at[I + H + 1:I + 2 * H + 1, 0:O].set(w_fc.T.astype(jnp.float32))
    p = p.at[I + 2 * H + 1, 0:O].set(b_fc.astype(jnp.float32))
    return p


@partial(jax.jit, static_argnames=("out_size",))
def rnn_qnetwork_forward(x, hidden, packed_params, *, out_size):
    """x: (B, S, I) float32, hidden: (1, B, H) float32. Returns (q_values, hidden_out)."""
    B, S, I = x.shape
    H = hidden.shape[-1]
    O = out_size
    B_pad = ((B + 7) // 8) * 8                       # one sublane tile per timestep

    # Layout glue (fused under jit): time-major rows, zero-padded batch.
    x_tm = jnp.transpose(x, (1, 0, 2)).astype(jnp.float32)           # (S, B, I)
    x_tm = jnp.pad(x_tm, ((0, 0), (0, B_pad - B), (0, 0)))           # (S, B_pad, I)
    x2d = x_tm.reshape(S * B_pad, I)                                 # (S*B_pad, I)
    h0 = jnp.pad(hidden[0].astype(jnp.float32), ((0, B_pad - B), (0, 0)))  # (B_pad, H)

    vmem = pl.BlockSpec(memory_space=pltpu.MemorySpace.VMEM)
    kernel = partial(_rnn_fc_kernel, seq_len=S, in_size=I, hid_size=H, out_size=O)

    q2d, h_n = pl.pallas_call(
        kernel,
        out_shape=(
            jax.ShapeDtypeStruct((S * B_pad, O), jnp.float32),
            jax.ShapeDtypeStruct((B_pad, H), jnp.float32),
        ),
        in_specs=[vmem, vmem, vmem],
        out_specs=(vmem, vmem),
    )(x2d, h0, packed_params)

    q_values = jnp.transpose(q2d.reshape(S, B_pad, O), (1, 0, 2))[:B]   # (B, S, O)
    hidden_out = h_n[None, :B, :]                                       # (1, B, H)
    return q_values, hidden_out


def _reference_forward(x, hidden, params):
    """Pure-JAX reference matching nn.RNN(batch_first=True) + nn.Linear."""
    w_ih, w_hh, b_ih, b_hh, w_fc, b_fc = (
        params["w_ih"], params["w_hh"], params["b_ih"], params["b_hh"],
        params["w_fc"], params["b_fc"],
    )
    h0 = hidden[0]

    def step(h, x_t):
        h_new = jnp.tanh(x_t @ w_ih.T + b_ih + h @ w_hh.T + b_hh)
        return h_new, h_new

    x_tm = jnp.transpose(x, (1, 0, 2))
    h_last, outs = lax.scan(step, h0, x_tm)
    out = jnp.transpose(outs, (1, 0, 2))
    q = out @ w_fc.T + b_fc
    return q, h_last[None, :, :]


def init_params(key, input_size, hidden_size, output_size):
    k = jax.random.split(key, 6)
    s = 1.0 / jnp.sqrt(hidden_size)
    return {
        "w_ih": jax.random.uniform(k[0], (hidden_size, input_size), jnp.float32, -s, s),
        "w_hh": jax.random.uniform(k[1], (hidden_size, hidden_size), jnp.float32, -s, s),
        "b_ih": jax.random.uniform(k[2], (hidden_size,), jnp.float32, -s, s),
        "b_hh": jax.random.uniform(k[3], (hidden_size,), jnp.float32, -s, s),
        "w_fc": jax.random.uniform(k[4], (output_size, hidden_size), jnp.float32, -s, s),
        "b_fc": jax.random.uniform(k[5], (output_size,), jnp.float32, -s, s),
    }


if __name__ == "__main__":
    input_size, hidden_size, output_size = 6, 5, 3
    batch, seq = 4, 8

    key = jax.random.PRNGKey(0)
    kx, kp = jax.random.split(key)
    params = init_params(kp, input_size, hidden_size, output_size)

    x = jax.random.normal(kx, (batch, seq, input_size), dtype=jnp.float32)
    hidden0 = jnp.zeros((1, batch, hidden_size), dtype=jnp.float32)  # init_hidden

    packed = pack_params(params)                     # once per parameter set
    q_values, hidden_out = rnn_qnetwork_forward(x, hidden0, packed, out_size=output_size)
    q_values = jax.block_until_ready(q_values)
    hidden_out = jax.block_until_ready(hidden_out)

    q_ref, h_ref = _reference_forward(x, hidden0, params)
    assert q_values.shape == (batch, seq, output_size)
    assert hidden_out.shape == (1, batch, hidden_size)
    assert jnp.allclose(q_values, q_ref, atol=1e-5, rtol=1e-5)
    assert jnp.allclose(hidden_out, h_ref, atol=1e-5, rtol=1e-5)

    print("KERNEL_OK")
</pallas_src>

<mosaic_0001>
module attributes {stable_mosaic.version = 11 : i64} {
  func.func @_rnn_fc_kernel(%arg0: memref<64x6xf32, #tpu.memory_space<vmem>>, %arg1: memref<8x5xf32, #tpu.memory_space<vmem>>, %arg2: memref<24x128xf32, #tpu.memory_space<vmem>>, %arg3: memref<64x3xf32, #tpu.memory_space<vmem>>, %arg4: memref<8x5xf32, #tpu.memory_space<vmem>>) attributes {dimension_semantics = [], scalar_prefetch = 0 : i64, scratch_operands = 0 : i64, tpu.core_type = #tpu.core_type<tc>} {
    %c0 = arith.constant 0 : index
    %c0_0 = arith.constant 0 : index
    %0 = vector.load %arg2[%c0, %c0_0] : memref<24x128xf32, #tpu.memory_space<vmem>>, vector<24x128xf32>
    %1 = vector.extract_strided_slice %0 {offsets = [0, 0], sizes = [6, 5], strides = [1, 1]} : vector<24x128xf32> to vector<6x5xf32>
    %2 = vector.extract_strided_slice %0 {offsets = [11, 0], sizes = [1, 5], strides = [1, 1]} : vector<24x128xf32> to vector<1x5xf32>
    %3 = vector.extract_strided_slice %0 {offsets = [12, 0], sizes = [5, 3], strides = [1, 1]} : vector<24x128xf32> to vector<5x3xf32>
    %4 = vector.extract_strided_slice %0 {offsets = [17, 0], sizes = [1, 3], strides = [1, 1]} : vector<24x128xf32> to vector<1x3xf32>
    %5 = vector.extract_strided_slice %0 {offsets = [6, 0], sizes = [1, 5], strides = [1, 1]} : vector<24x128xf32> to vector<1x5xf32>
    %6 = vector.shape_cast %5 : vector<1x5xf32> to vector<1x5xf32>
    %7 = vector.broadcast %6 : vector<1x5xf32> to vector<8x5xf32>
    %8 = vector.extract_strided_slice %0 {offsets = [7, 0], sizes = [1, 5], strides = [1, 1]} : vector<24x128xf32> to vector<1x5xf32>
    %9 = vector.shape_cast %8 : vector<1x5xf32> to vector<1x5xf32>
    %10 = vector.broadcast %9 : vector<1x5xf32> to vector<8x5xf32>
    %11 = vector.extract_strided_slice %0 {offsets = [8, 0], sizes = [1, 5], strides = [1, 1]} : vector<24x128xf32> to vector<1x5xf32>
    %12 = vector.shape_cast %11 : vector<1x5xf32> to vector<1x5xf32>
    %13 = vector.broadcast %12 : vector<1x5xf32> to vector<8x5xf32>
    %14 = vector.extract_strided_slice %0 {offsets = [9, 0], sizes = [1, 5], strides = [1, 1]} : vector<24x128xf32> to vector<1x5xf32>
    %15 = vector.shape_cast %14 : vector<1x5xf32> to vector<1x5xf32>
    %16 = vector.broadcast %15 : vector<1x5xf32> to vector<8x5xf32>
    %17 = vector.extract_strided_slice %0 {offsets = [10, 0], sizes = [1, 5], strides = [1, 1]} : vector<24x128xf32> to vector<1x5xf32>
    %18 = vector.shape_cast %17 : vector<1x5xf32> to vector<1x5xf32>
    %19 = vector.broadcast %18 : vector<1x5xf32> to vector<8x5xf32>
    %c0_1 = arith.constant 0 : index
    %c0_2 = arith.constant 0 : index
    %20 = vector.load %arg0[%c0_1, %c0_2] : memref<64x6xf32, #tpu.memory_space<vmem>>, vector<64x6xf32>
    %cst = arith.constant dense<0.000000e+00> : vector<64x5xf32>
    %21 = tpu.matmul %20, %1, %cst {dimension_numbers = #tpu.dot_dimension_numbers<[1], [0], [0], [1], [0, 0, 1, 1], [], []>, precision = #tpu.contract_precision<fp32>} : vector<64x6xf32>, vector<6x5xf32>, vector<64x5xf32> -> vector<64x5xf32>
    %22 = vector.broadcast %2 : vector<1x5xf32> to vector<64x5xf32>
    %23 = arith.addf %21, %22 : vector<64x5xf32>
    %c0_3 = arith.constant 0 : index
    %c0_4 = arith.constant 0 : index
    %24 = vector.load %arg1[%c0_3, %c0_4] : memref<8x5xf32, #tpu.memory_space<vmem>>, vector<8x5xf32>
    %25 = vector.extract_strided_slice %23 {offsets = [0, 0], sizes = [8, 5], strides = [1, 1]} : vector<64x5xf32> to vector<8x5xf32>
    %26 = vector.extract_strided_slice %24 {offsets = [0, 0], sizes = [8, 1], strides = [1, 1]} : vector<8x5xf32> to vector<8x1xf32>
    %27 = vector.broadcast %26 : vector<8x1xf32> to vector<8x5xf32>
    %28 = arith.mulf %27, %7 : vector<8x5xf32>
    %29 = vector.extract_strided_slice %24 {offsets = [0, 1], sizes = [8, 1], strides = [1, 1]} : vector<8x5xf32> to vector<8x1xf32>
    %30 = vector.broadcast %29 : vector<8x1xf32> to vector<8x5xf32>
    %31 = arith.mulf %30, %10 : vector<8x5xf32>
    %32 = vector.extract_strided_slice %24 {offsets = [0, 2], sizes = [8, 1], strides = [1, 1]} : vector<8x5xf32> to vector<8x1xf32>
    %33 = vector.broadcast %32 : vector<8x1xf32> to vector<8x5xf32>
    %34 = arith.mulf %33, %13 : vector<8x5xf32>
    %35 = vector.extract_strided_slice %24 {offsets = [0, 3], sizes = [8, 1], strides = [1, 1]} : vector<8x5xf32> to vector<8x1xf32>
    %36 = vector.broadcast %35 : vector<8x1xf32> to vector<8x5xf32>
    %37 = arith.mulf %36, %16 : vector<8x5xf32>
    %38 = vector.extract_strided_slice %24 {offsets = [0, 4], sizes = [8, 1], strides = [1, 1]} : vector<8x5xf32> to vector<8x1xf32>
    %39 = vector.broadcast %38 : vector<8x1xf32> to vector<8x5xf32>
    %40 = arith.mulf %39, %19 : vector<8x5xf32>
    %41 = arith.addf %28, %31 : vector<8x5xf32>
    %42 = arith.addf %34, %37 : vector<8x5xf32>
    %43 = arith.addf %41, %42 : vector<8x5xf32>
    %44 = arith.addf %43, %40 : vector<8x5xf32>
    %45 = arith.addf %25, %44 : vector<8x5xf32>
    %46 = math.tanh %45 : vector<8x5xf32>
    %47 = vector.extract_strided_slice %23 {offsets = [8, 0], sizes = [8, 5], strides = [1, 1]} : vector<64x5xf32> to vector<8x5xf32>
    %48 = vector.extract_strided_slice %46 {offsets = [0, 0], sizes = [8, 1], strides = [1, 1]} : vector<8x5xf32> to vector<8x1xf32>
    %49 = vector.broadcast %48 : vector<8x1xf32> to vector<8x5xf32>
    %50 = arith.mulf %49, %7 : vector<8x5xf32>
    %51 = vector.extract_strided_slice %46 {offsets = [0, 1], sizes = [8, 1], strides = [1, 1]} : vector<8x5xf32> to vector<8x1xf32>
    %52 = vector.broadcast %51 : vector<8x1xf32> to vector<8x5xf32>
    %53 = arith.mulf %52, %10 : vector<8x5xf32>
    %54 = vector.extract_strided_slice %46 {offsets = [0, 2], sizes = [8, 1], strides = [1, 1]} : vector<8x5xf32> to vector<8x1xf32>
    %55 = vector.broadcast %54 : vector<8x1xf32> to vector<8x5xf32>
    %56 = arith.mulf %55, %13 : vector<8x5xf32>
    %57 = vector.extract_strided_slice %46 {offsets = [0, 3], sizes = [8, 1], strides = [1, 1]} : vector<8x5xf32> to vector<8x1xf32>
    %58 = vector.broadcast %57 : vector<8x1xf32> to vector<8x5xf32>
    %59 = arith.mulf %58, %16 : vector<8x5xf32>
    %60 = vector.extract_strided_slice %46 {offsets = [0, 4], sizes = [8, 1], strides = [1, 1]} : vector<8x5xf32> to vector<8x1xf32>
    %61 = vector.broadcast %60 : vector<8x1xf32> to vector<8x5xf32>
    %62 = arith.mulf %61, %19 : vector<8x5xf32>
    %63 = arith.addf %50, %53 : vector<8x5xf32>
    %64 = arith.addf %56, %59 : vector<8x5xf32>
    %65 = arith.addf %63, %64 : vector<8x5xf32>
    %66 = arith.addf %65, %62 : vector<8x5xf32>
    %67 = arith.addf %47, %66 : vector<8x5xf32>
    %68 = math.tanh %67 : vector<8x5xf32>
    %69 = vector.extract_strided_slice %23 {offsets = [16, 0], sizes = [8, 5], strides = [1, 1]} : vector<64x5xf32> to vector<8x5xf32>
    %70 = vector.extract_strided_slice %68 {offsets = [0, 0], sizes = [8, 1], strides = [1, 1]} : vector<8x5xf32> to vector<8x1xf32>
    %71 = vector.broadcast %70 : vector<8x1xf32> to vector<8x5xf32>
    %72 = arith.mulf %71, %7 : vector<8x5xf32>
    %73 = vector.extract_strided_slice %68 {offsets = [0, 1], sizes = [8, 1], strides = [1, 1]} : vector<8x5xf32> to vector<8x1xf32>
    %74 = vector.broadcast %73 : vector<8x1xf32> to vector<8x5xf32>
    %75 = arith.mulf %74, %10 : vector<8x5xf32>
    %76 = vector.extract_strided_slice %68 {offsets = [0, 2], sizes = [8, 1], strides = [1, 1]} : vector<8x5xf32> to vector<8x1xf32>
    %77 = vector.broadcast %76 : vector<8x1xf32> to vector<8x5xf32>
    %78 = arith.mulf %77, %13 : vector<8x5xf32>
    %79 = vector.extract_strided_slice %68 {offsets = [0, 3], sizes = [8, 1], strides = [1, 1]} : vector<8x5xf32> to vector<8x1xf32>
    %80 = vector.broadcast %79 : vector<8x1xf32> to vector<8x5xf32>
    %81 = arith.mulf %80, %16 : vector<8x5xf32>
    %82 = vector.extract_strided_slice %68 {offsets = [0, 4], sizes = [8, 1], strides = [1, 1]} : vector<8x5xf32> to vector<8x1xf32>
    %83 = vector.broadcast %82 : vector<8x1xf32> to vector<8x5xf32>
    %84 = arith.mulf %83, %19 : vector<8x5xf32>
    %85 = arith.addf %72, %75 : vector<8x5xf32>
    %86 = arith.addf %78, %81 : vector<8x5xf32>
    %87 = arith.addf %85, %86 : vector<8x5xf32>
    %88 = arith.addf %87, %84 : vector<8x5xf32>
    %89 = arith.addf %69, %88 : vector<8x5xf32>
    %90 = math.tanh %89 : vector<8x5xf32>
    %91 = vector.extract_strided_slice %23 {offsets = [24, 0], sizes = [8, 5], strides = [1, 1]} : vector<64x5xf32> to vector<8x5xf32>
    %92 = vector.extract_strided_slice %90 {offsets = [0, 0], sizes = [8, 1], strides = [1, 1]} : vector<8x5xf32> to vector<8x1xf32>
    %93 = vector.broadcast %92 : vector<8x1xf32> to vector<8x5xf32>
    %94 = arith.mulf %93, %7 : vector<8x5xf32>
    %95 = vector.extract_strided_slice %90 {offsets = [0, 1], sizes = [8, 1], strides = [1, 1]} : vector<8x5xf32> to vector<8x1xf32>
    %96 = vector.broadcast %95 : vector<8x1xf32> to vector<8x5xf32>
    %97 = arith.mulf %96, %10 : vector<8x5xf32>
    %98 = vector.extract_strided_slice %90 {offsets = [0, 2], sizes = [8, 1], strides = [1, 1]} : vector<8x5xf32> to vector<8x1xf32>
    %99 = vector.broadcast %98 : vector<8x1xf32> to vector<8x5xf32>
    %100 = arith.mulf %99, %13 : vector<8x5xf32>
    %101 = vector.extract_strided_slice %90 {offsets = [0, 3], sizes = [8, 1], strides = [1, 1]} : vector<8x5xf32> to vector<8x1xf32>
    %102 = vector.broadcast %101 : vector<8x1xf32> to vector<8x5xf32>
    %103 = arith.mulf %102, %16 : vector<8x5xf32>
    %104 = vector.extract_strided_slice %90 {offsets = [0, 4], sizes = [8, 1], strides = [1, 1]} : vector<8x5xf32> to vector<8x1xf32>
    %105 = vector.broadcast %104 : vector<8x1xf32> to vector<8x5xf32>
    %106 = arith.mulf %105, %19 : vector<8x5xf32>
    %107 = arith.addf %94, %97 : vector<8x5xf32>
    %108 = arith.addf %100, %103 : vector<8x5xf32>
    %109 = arith.addf %107, %108 : vector<8x5xf32>
    %110 = arith.addf %109, %106 : vector<8x5xf32>
    %111 = arith.addf %91, %110 : vector<8x5xf32>
    %112 = math.tanh %111 : vector<8x5xf32>
    %113 = vector.extract_strided_slice %23 {offsets = [32, 0], sizes = [8, 5], strides = [1, 1]} : vector<64x5xf32> to vector<8x5xf32>
    %114 = vector.extract_strided_slice %112 {offsets = [0, 0], sizes = [8, 1], strides = [1, 1]} : vector<8x5xf32> to vector<8x1xf32>
    %115 = vector.broadcast %114 : vector<8x1xf32> to vector<8x5xf32>
    %116 = arith.mulf %115, %7 : vector<8x5xf32>
    %117 = vector.extract_strided_slice %112 {offsets = [0, 1], sizes = [8, 1], strides = [1, 1]} : vector<8x5xf32> to vector<8x1xf32>
    %118 = vector.broadcast %117 : vector<8x1xf32> to vector<8x5xf32>
    %119 = arith.mulf %118, %10 : vector<8x5xf32>
    %120 = vector.extract_strided_slice %112 {offsets = [0, 2], sizes = [8, 1], strides = [1, 1]} : vector<8x5xf32> to vector<8x1xf32>
    %121 = vector.broadcast %120 : vector<8x1xf32> to vector<8x5xf32>
    %122 = arith.mulf %121, %13 : vector<8x5xf32>
    %123 = vector.extract_strided_slice %112 {offsets = [0, 3], sizes = [8, 1], strides = [1, 1]} : vector<8x5xf32> to vector<8x1xf32>
    %124 = vector.broadcast %123 : vector<8x1xf32> to vector<8x5xf32>
    %125 = arith.mulf %124, %16 : vector<8x5xf32>
    %126 = vector.extract_strided_slice %112 {offsets = [0, 4], sizes = [8, 1], strides = [1, 1]} : vector<8x5xf32> to vector<8x1xf32>
    %127 = vector.broadcast %126 : vector<8x1xf32> to vector<8x5xf32>
    %128 = arith.mulf %127, %19 : vector<8x5xf32>
    %129 = arith.addf %116, %119 : vector<8x5xf32>
    %130 = arith.addf %122, %125 : vector<8x5xf32>
    %131 = arith.addf %129, %130 : vector<8x5xf32>
    %132 = arith.addf %131, %128 : vector<8x5xf32>
    %133 = arith.addf %113, %132 : vector<8x5xf32>
    %134 = math.tanh %133 : vector<8x5xf32>
    %135 = vector.extract_strided_slice %23 {offsets = [40, 0], sizes = [8, 5], strides = [1, 1]} : vector<64x5xf32> to vector<8x5xf32>
    %136 = vector.extract_strided_slice %134 {offsets = [0, 0], sizes = [8, 1], strides = [1, 1]} : vector<8x5xf32> to vector<8x1xf32>
    %137 = vector.broadcast %136 : vector<8x1xf32> to vector<8x5xf32>
    %138 = arith.mulf %137, %7 : vector<8x5xf32>
    %139 = vector.extract_strided_slice %134 {offsets = [0, 1], sizes = [8, 1], strides = [1, 1]} : vector<8x5xf32> to vector<8x1xf32>
    %140 = vector.broadcast %139 : vector<8x1xf32> to vector<8x5xf32>
    %141 = arith.mulf %140, %10 : vector<8x5xf32>
    %142 = vector.extract_strided_slice %134 {offsets = [0, 2], sizes = [8, 1], strides = [1, 1]} : vector<8x5xf32> to vector<8x1xf32>
    %143 = vector.broadcast %142 : vector<8x1xf32> to vector<8x5xf32>
    %144 = arith.mulf %143, %13 : vector<8x5xf32>
    %145 = vector.extract_strided_slice %134 {offsets = [0, 3], sizes = [8, 1], strides = [1, 1]} : vector<8x5xf32> to vector<8x1xf32>
    %146 = vector.broadcast %145 : vector<8x1xf32> to vector<8x5xf32>
    %147 = arith.mulf %146, %16 : vector<8x5xf32>
    %148 = vector.extract_strided_slice %134 {offsets = [0, 4], sizes = [8, 1], strides = [1, 1]} : vector<8x5xf32> to vector<8x1xf32>
    %149 = vector.broadcast %148 : vector<8x1xf32> to vector<8x5xf32>
    %150 = arith.mulf %149, %19 : vector<8x5xf32>
    %151 = arith.addf %138, %141 : vector<8x5xf32>
    %152 = arith.addf %144, %147 : vector<8x5xf32>
    %153 = arith.addf %151, %152 : vector<8x5xf32>
    %154 = arith.addf %153, %150 : vector<8x5xf32>
    %155 = arith.addf %135, %154 : vector<8x5xf32>
    %156 = math.tanh %155 : vector<8x5xf32>
    %157 = vector.extract_strided_slice %23 {offsets = [48, 0], sizes = [8, 5], strides = [1, 1]} : vector<64x5xf32> to vector<8x5xf32>
    %158 = vector.extract_strided_slice %156 {offsets = [0, 0], sizes = [8, 1], strides = [1, 1]} : vector<8x5xf32> to vector<8x1xf32>
    %159 = vector.broadcast %158 : vector<8x1xf32> to vector<8x5xf32>
    %160 = arith.mulf %159, %7 : vector<8x5xf32>
    %161 = vector.extract_strided_slice %156 {offsets = [0, 1], sizes = [8, 1], strides = [1, 1]} : vector<8x5xf32> to vector<8x1xf32>
    %162 = vector.broadcast %161 : vector<8x1xf32> to vector<8x5xf32>
    %163 = arith.mulf %162, %10 : vector<8x5xf32>
    %164 = vector.extract_strided_slice %156 {offsets = [0, 2], sizes = [8, 1], strides = [1, 1]} : vector<8x5xf32> to vector<8x1xf32>
    %165 = vector.broadcast %164 : vector<8x1xf32> to vector<8x5xf32>
    %166 = arith.mulf %165, %13 : vector<8x5xf32>
    %167 = vector.extract_strided_slice %156 {offsets = [0, 3], sizes = [8, 1], strides = [1, 1]} : vector<8x5xf32> to vector<8x1xf32>
    %168 = vector.broadcast %167 : vector<8x1xf32> to vector<8x5xf32>
    %169 = arith.mulf %168, %16 : vector<8x5xf32>
    %170 = vector.extract_strided_slice %156 {offsets = [0, 4], sizes = [8, 1], strides = [1, 1]} : vector<8x5xf32> to vector<8x1xf32>
    %171 = vector.broadcast %170 : vector<8x1xf32> to vector<8x5xf32>
    %172 = arith.mulf %171, %19 : vector<8x5xf32>
    %173 = arith.addf %160, %163 : vector<8x5xf32>
    %174 = arith.addf %166, %169 : vector<8x5xf32>
    %175 = arith.addf %173, %174 : vector<8x5xf32>
    %176 = arith.addf %175, %172 : vector<8x5xf32>
    %177 = arith.addf %157, %176 : vector<8x5xf32>
    %178 = math.tanh %177 : vector<8x5xf32>
    %179 = vector.extract_strided_slice %23 {offsets = [56, 0], sizes = [8, 5], strides = [1, 1]} : vector<64x5xf32> to vector<8x5xf32>
    %180 = vector.extract_strided_slice %178 {offsets = [0, 0], sizes = [8, 1], strides = [1, 1]} : vector<8x5xf32> to vector<8x1xf32>
    %181 = vector.broadcast %180 : vector<8x1xf32> to vector<8x5xf32>
    %182 = arith.mulf %181, %7 : vector<8x5xf32>
    %183 = vector.extract_strided_slice %178 {offsets = [0, 1], sizes = [8, 1], strides = [1, 1]} : vector<8x5xf32> to vector<8x1xf32>
    %184 = vector.broadcast %183 : vector<8x1xf32> to vector<8x5xf32>
    %185 = arith.mulf %184, %10 : vector<8x5xf32>
    %186 = vector.extract_strided_slice %178 {offsets = [0, 2], sizes = [8, 1], strides = [1, 1]} : vector<8x5xf32> to vector<8x1xf32>
    %187 = vector.broadcast %186 : vector<8x1xf32> to vector<8x5xf32>
    %188 = arith.mulf %187, %13 : vector<8x5xf32>
    %189 = vector.extract_strided_slice %178 {offsets = [0, 3], sizes = [8, 1], strides = [1, 1]} : vector<8x5xf32> to vector<8x1xf32>
    %190 = vector.broadcast %189 : vector<8x1xf32> to vector<8x5xf32>
    %191 = arith.mulf %190, %16 : vector<8x5xf32>
    %192 = vector.extract_strided_slice %178 {offsets = [0, 4], sizes = [8, 1], strides = [1, 1]} : vector<8x5xf32> to vector<8x1xf32>
    %193 = vector.broadcast %192 : vector<8x1xf32> to vector<8x5xf32>
    %194 = arith.mulf %193, %19 : vector<8x5xf32>
    %195 = arith.addf %182, %185 : vector<8x5xf32>
    %196 = arith.addf %188, %191 : vector<8x5xf32>
    %197 = arith.addf %195, %196 : vector<8x5xf32>
    %198 = arith.addf %197, %194 : vector<8x5xf32>
    %199 = arith.addf %179, %198 : vector<8x5xf32>
    %200 = math.tanh %199 : vector<8x5xf32>
    %c0_5 = arith.constant 0 : index
    %c0_6 = arith.constant 0 : index
    %201 = vector.load %arg4[%c0_5, %c0_6] : memref<8x5xf32, #tpu.memory_space<vmem>>, vector<8x5xf32>
    tpu.vector_store %arg4[%c0_5, %c0_6], %200 {strides = array<i32>} : memref<8x5xf32, #tpu.memory_space<vmem>>, vector<8x5xf32>,
    %202 = tpu.concatenate %46, %68, %90, %112, %134, %156, %178, %200 in 0 : vector<8x5xf32>, vector<8x5xf32>, vector<8x5xf32>, vector<8x5xf32>, vector<8x5xf32>, vector<8x5xf32>, vector<8x5xf32>, vector<8x5xf32> -> vector<64x5xf32>
    %cst_7 = arith.constant dense<0.000000e+00> : vector<64x3xf32>
    %203 = tpu.matmul %202, %3, %cst_7 {dimension_numbers = #tpu.dot_dimension_numbers<[1], [0], [0], [1], [0, 0, 1, 1], [], []>, precision = #tpu.contract_precision<fp32>} : vector<64x5xf32>, vector<5x3xf32>, vector<64x3xf32> -> vector<64x3xf32>
    %204 = vector.broadcast %4 : vector<1x3xf32> to vector<64x3xf32>
    %205 = arith.addf %203, %204 : vector<64x3xf32>
    %c0_8 = arith.constant 0 : index
    %c0_9 = arith.constant 0 : index
    %206 = vector.load %arg3[%c0_8, %c0_9] : memref<64x3xf32, #tpu.memory_space<vmem>>, vector<64x3xf32>
    tpu.vector_store %arg3[%c0_8, %c0_9], %205 {strides = array<i32>} : memref<64x3xf32, #tpu.memory_space<vmem>>, vector<64x3xf32>,
    return
  }
}

</mosaic_0001>

<bundles_post_ra>
// kernel: rnn_qnetwork_forward.1
= control target key start
LH: loop header
LB: loop body
LE: loop exit
PB: predicated region body
PF: predicated region fallthrough
CT: control target
= control target key end

     0   :  { %vm76_vm0 = vcmask 1045504   ;;  %vm51_vm1 = vcmask 48128   ;;  %v2314_v2 = vmov 2   ;;  %v2315_v8 = vmov 0   ;;  %s2810_s2 = inlined_call_operand.vmem [shape: f32[24,128], index: 2, kind: input, shape index: {}]   ;;  %s2811_s0 = inlined_call_operand.vmem [shape: f32[64,6], index: 0, kind: input, shape index: {}]   ;;  %s2812_s1 = inlined_call_operand.vmem [shape: f32[8,5], index: 1, kind: input, shape index: {}]   ;;  %s2813_s4 = inlined_call_operand.vmem [shape: f32[8,5], index: 4, kind: output, shape index: {1}]   ;;  %s2814_s3 = inlined_call_operand.vmem [shape: f32[64,3], index: 3, kind: output, shape index: {0}]  }
   0x1   :  { %v2347_v0 = vld [vmem:[%s2810_s2] sm:$0xff]  ;;  %2259 = vset.pattern.permute.xlu1 %v2314_v2  ;;  %v40_v5 = vld [vmem:[%s2811_s0 + $0x8] sm:$0xff]  ;;  %v41_v6 = vld [vmem:[%s2811_s0 + $0x10] sm:$0xff]  ;;  %2257 = vset.pattern.permute.xlu0 %v2315_v8  ;;  %v2316_v46 = vmov 3   ;;  %v2317_v47 = vmov 1   ;;  %v2318_v63 = vmov 4  }
   0x2   :  { %v39_v1 = vld [vmem:[%s2811_s0] sm:$0xff]  ;;  %v78_v3 = vsel %vm76_vm0, %v2347_v0, 0  ;;  %v42_v7 = vld [vmem:[%s2811_s0 + $0x18] sm:$0xff]  ;;  %v56_v11 = vsel %vm51_vm1, %v40_v5, 0  ;;  %v59_v12 = vsel %vm51_vm1, %v41_v6, 0  ;;  %v44_v20 = vld [vmem:[%s2811_s0 + $0x28] sm:$0xff] }
   0x3   :  { %v53_v4 = vsel %vm51_vm1, %v39_v1, 0  ;;  %v2365_v9 = vand.u32 4294901760, %v78_v3  ;;  %v43_v13 = vld [vmem:[%s2811_s0 + $0x20] sm:$0xff]  ;;  %v2374_v14 = vand.u32 4294901760, %v56_v11  ;;  %v2376_v15 = vand.u32 4294901760, %v59_v12  ;;  %v45_v21 = vld [vmem:[%s2811_s0 + $0x30] sm:$0xff] }
   0x4   :  { %v2367_v10 = vand.u32 4294901760, %v53_v4  ;;  %v62_v18 = vsel %vm51_vm1, %v42_v7, 0  ;;  %v65_v19 = vsel %vm51_vm1, %v43_v13, 0  ;;  %v827_v22 = vld [vmem:[%s2812_s1] sm:$0xff]  ;;  %v68_v31 = vsel %vm51_vm1, %v44_v20, 0  ;;  %v46_v41 = vld [vmem:[%s2811_s0 + $0x38] sm:$0xff] }
   0x5   :  { %1988 = vmatprep.subr.mxu0 %v2365_v9  ;;  %v2383_v17 = vsub.f32 %v78_v3, %v2365_v9  ;;  %v2398_v23 = vsub.f32 %v56_v11, %v2374_v14  ;;  %v2401_v24 = vsub.f32 %v59_v12, %v2376_v15  ;;  %v2407_v27 = vand.u32 4294901760, %v62_v18  ;;  %840 = vperm.xlu1 %2259, %v827_v22  }
   0x6   :  { %v2380_v16 = vsub.f32 %v53_v4, %v2367_v10  ;;  %1989 = vmatpush3.msra.mxu0 %v2365_v9  ;;  %v2409_v28 = vand.u32 4294901760, %v65_v19  ;;  %830 = vperm.xlu0 %2257, %v827_v22   ;;  %v71_v32 = vsel %vm51_vm1, %v45_v21, 0  ;;  %v2432_v39 = vand.u32 4294901760, %v68_v31 }
   0x7   :  { %v2405_v26 = vand.u32 4294901760, %v2383_v17  ;;  %v158_v29 = vand.u32 4294901760, %v2398_v23  ;;  %v168_v30 = vand.u32 4294901760, %v2401_v24  ;;  %v2421_v35 = vsub.f32 %v62_v18, %v2407_v27 }
   0x8   :  { %v148_v25 = vand.u32 4294901760, %v2380_v16  ;;  %v2424_v36 = vsub.f32 %v65_v19, %v2409_v28  ;;  %v2434_v40 = vand.u32 4294901760, %v71_v32  ;;  %v2444_v50 = vsub.f32 %v68_v31, %v2432_v39 }
   0x9   :  { %v230_v34 = vsub.f32 %v2383_v17, %v2405_v26  ;;  %v159_v37 = vsub.f32 %v2398_v23, %v158_v29  ;;  %v169_v38 = vsub.f32 %v2401_v24, %v168_v30  ;;  %v178_v44 = vand.u32 4294901760, %v2421_v35  ;;  %2260 = vset.pattern.permute.xlu1 %v2316_v46 }
   0xa   :  { %v149_v33 = vsub.f32 %v2380_v16, %v148_v25  ;;  %v188_v45 = vand.u32 4294901760, %v2424_v36  ;;  %2258 = vset.pattern.permute.xlu0 %v2317_v47  ;;  %v2447_v51 = vsub.f32 %v71_v32, %v2434_v40  ;;  %845 = vperm.xlu1 %2260, %v827_v22   ;;  %v74_v54 = vsel %vm51_vm1, %v46_v41, 0 }
   0xb   :  { %v231_v43 = vand.u32 4294901760, %v230_v34  ;;  %v160_v48 = vand.u32 4294901760, %v159_v37  ;;  %v170_v49 = vand.u32 4294901760, %v169_v38  ;;  %835 = vperm.xlu0 %2258, %v827_v22   ;;  %v179_v52 = vsub.f32 %v2421_v35, %v178_v44 }
   0xc   :  { %v150_v42 = vand.u32 4294901760, %v149_v33  ;;  %v189_v53 = vsub.f32 %v2424_v36, %v188_v45  ;;  %v198_v55 = vand.u32 4294901760, %v2444_v50  ;;  %v208_v56 = vand.u32 4294901760, %v2447_v51 }
   0xd   :  { %2002 = vmatprep.subr.mxu0 %v231_v43  ;;  %v2458_v57 = vand.u32 4294901760, %v74_v54  ;;  %v180_v58 = vand.u32 4294901760, %v179_v52  ;;  %v19_v7 = vlaneseq  ;;  %vm1084_vm2 = vcmask 39936  }
   0xe   :  { %1990 = vmatprep.mubr.f32.mxu0 %v150_v42  ;;  %v190_v59 = vand.u32 4294901760, %v189_v53  ;;  %v199_v60 = vsub.f32 %v2444_v50, %v198_v55  ;;  %v209_v61 = vsub.f32 %v2447_v51, %v208_v56  ;;  %2261 = vset.pattern.permute.xlu1 %v2318_v63  ;;  %vm1092_vm3 = vcmask 1043456  }
   0xf   :  { %1991 = vmatmul.mubr.f32.vlgmr.msra.gmra.mrb[0].mxu0 %v160_v48  ;;  %v217_v62 = vsub.f32 %v74_v54, %v2458_v57  ;;  %850 = vperm.xlu1 %2261, %v827_v22   ;;  %vm1113_vm4 = vcmask 1044480   ;;  %vm1863_vm5 = vcmask 23552  }
  0x10   :  { %2003 = vmatpush3.msra.mxu0 %v231_v43  ;;  %1993 = vmatprep.mubr.f32.mxu0 %v170_v49  ;;  %v200_v1 = vand.u32 4294901760, %v199_v60  ;;  %v210_v4 = vand.u32 4294901760, %v209_v61 }
  0x11   :  { %2016 = vmatprep.subr.mxu0 %v2383_v17  ;;  %2262 = vset.pattern.permute.xlu0 %v2315_v8  ;;  %v218_v3 = vand.u32 4294901760, %v217_v62 }
  0x13   :  { %1994 = vmatmul.mubr.f32.gmra.mrb[2].mxu0 %v180_v58  ;;  %v219_v5 = vsub.f32 %v217_v62, %v218_v3  ;;  %2263 = vset.pattern.permute.xlu1 %v2317_v47 }
  0x14   :  { %1996 = vmatprep.mubr.f32.mxu0 %v190_v59 }
  0x15   :  { %v220_v6 = vand.u32 4294901760, %v219_v5 }
  0x17   :  { %1997 = vmatmul.mubr.f32.gmra.mrb[4].mxu0 %v200_v1 }
  0x18   :  { %1999 = vmatprep.mubr.f32.mxu0 %v210_v4 }
  0x1b   :  { %2000 = vmatmul.mubr.f32.gmra.mrb[6].mxu0 %v220_v6 }
  0x1c   :  { %2004 = vmatprep.mubr.f32.mxu0 %v2367_v10 }
  0x1f   :  { %2005 = vmatmul.mubr.f32.vlgmr.msra.gmra.mrb[0].mxu0 %v2374_v14 }
  0x20   :  { %2017 = vmatpush3.msra.mxu0 %v2383_v17  ;;  %2007 = vmatprep.mubr.f32.mxu0 %v2376_v15 }
  0x21   :  { %2030 = vmatprep.subr.mxu0 %v2365_v9 }
  0x23   :  { %2008 = vmatmul.mubr.f32.gmra.mrb[2].mxu0 %v2407_v27 }
  0x24   :  { %2010 = vmatprep.mubr.f32.mxu0 %v2409_v28 }
  0x27   :  { %2011 = vmatmul.mubr.f32.gmra.mrb[4].mxu0 %v2432_v39 }
  0x28   :  { %2013 = vmatprep.mubr.f32.mxu0 %v2434_v40 }
  0x2b   :  { %2014 = vmatmul.mubr.f32.gmra.mrb[6].mxu0 %v2458_v57 }
  0x2c   :  { %2018 = vmatprep.mubr.f32.mxu0 %v2380_v16  ;;  %v2524_v16 = vld [vmem:[%s2810_s2 + $0x8] sm:$0xff] }
  0x2d   :  { %v1093_v1 = vrot.slane %v2524_v16, 4 }
  0x2f   :  { %2019 = vmatmul.mubr.f32.vlgmr.msra.gmra.mrb[0].mxu0 %v2398_v23 }
  0x30   :  { %2031 = vmatpush3.msra.mxu0 %v2365_v9  ;;  %2021 = vmatprep.mubr.f32.mxu0 %v2401_v24 }
  0x31   :  { %2044 = vmatprep.subr.mxu0 %v2405_v26 }
  0x33   :  { %2022 = vmatmul.mubr.f32.gmra.mrb[2].mxu0 %v2421_v35 }
  0x34   :  { %2024 = vmatprep.mubr.f32.mxu0 %v2424_v36 }
  0x37   :  { %2025 = vmatmul.mubr.f32.gmra.mrb[4].mxu0 %v2444_v50 }
  0x38   :  { %2027 = vmatprep.mubr.f32.mxu0 %v2447_v51 }
  0x3b   :  { %2028 = vmatmul.mubr.f32.gmra.mrb[6].mxu0 %v217_v62  ;;  %v2581_v62 = vld [vmem:[%s2810_s2 + $0x10] sm:$0xff] }
  0x3c   :  { %2032 = vmatprep.mubr.f32.mxu0 %v148_v25 }
  0x3f   :  { %2033 = vmatmul.mubr.f32.vlgmr.msra.gmra.mrb[0].mxu0 %v158_v29 }
  0x40   :  { %2045 = vmatpush3.msra.mxu0 %v2405_v26  ;;  %2035 = vmatprep.mubr.f32.mxu0 %v168_v30 }
  0x41   :  { %2058 = vmatprep.subr.mxu0 %v2365_v9 }
  0x43   :  { %2036 = vmatmul.mubr.f32.gmra.mrb[2].mxu0 %v178_v44 }
  0x44   :  { %2038 = vmatprep.mubr.f32.mxu0 %v188_v45 }
  0x47   :  { %2039 = vmatmul.mubr.f32.gmra.mrb[4].mxu0 %v198_v55 }
  0x48   :  { %2041 = vmatprep.mubr.f32.mxu0 %v208_v56 }
  0x4b   :  { %2042 = vmatmul.mubr.f32.gmra.mrb[6].mxu0 %v218_v3  ;;  %v1094_v3 = vrot.slane %v2581_v62, 4 }
  0x4c   :  { %2046 = vmatprep.mubr.f32.mxu0 %v2367_v10 }
  0x4d   :  { %v1095_v4 = vsel %vm1092_vm3, %v1093_v1, %v1094_v3 }
  0x4e   :  { %v2585_v5 = vsel %vm1113_vm4, %v1095_v4, 0 }
  0x4f   :  { %2047 = vmatmul.mubr.f32.vlgmr.msra.gmra.mrb[0].mxu0 %v2374_v14  ;;  %v2588_v6 = vand.u32 4294901760, %v2585_v5 }
  0x50   :  { %2059 = vmatpush3.msra.mxu0 %v2365_v9  ;;  %2049 = vmatprep.mubr.f32.mxu0 %v2376_v15  ;;  %v2515_v9 = vshrl.u32 %v19_v7, 7 }
  0x51   :  { %2072 = vmatprep.subr.mxu1 %v2588_v6 }
  0x52   :  { %v25_v13 = vsub.s32 7, %v2515_v9  ;;  %v37_v23 = vsub.s32 2, %v2515_v9  ;;  %2073 = vmatpush3.msra.mxu1 %v2588_v6 }
  0x53   :  { %2050 = vmatmul.mubr.f32.gmra.mrb[2].mxu0 %v2407_v27 }
  0x54   :  { %2052 = vmatprep.mubr.f32.mxu0 %v2409_v28  ;;  %v2530_v18 = vrot.slane %v2347_v0, %v25_v13  ;;  %v2547_v30 = vrot.slane %v2524_v16, %v37_v23 }
  0x57   :  { %2053 = vmatmul.mubr.f32.gmra.mrb[4].mxu0 %v2432_v39 }
  0x58   :  { %2055 = vmatprep.mubr.f32.mxu0 %v2434_v40 }
  0x5b   :  { %2056 = vmatmul.mubr.f32.gmra.mrb[6].mxu0 %v2458_v57 }
  0x5c   :  { %2060 = vmatprep.mubr.f32.mxu0 %v2367_v10  ;;  %v21_v10 = vsub.s32 6, %v2515_v9 }
  0x5e   :  { %v2527_v17 = vrot.slane %v2347_v0, %v21_v10 }
  0x5f   :  { %2061 = vmatmul.mubr.f32.vlgmr.msra.gmra.mrb[0].mxu0 %v2374_v14  ;;  %v29_v14 = vsub.s32 0, %v2515_v9 }
  0x60   :  { %2063 = vmatprep.mubr.f32.mxu0 %v2376_v15  ;;  %v33_v15 = vsub.s32 1, %v2515_v9 }
  0x61   :  { %v2533_v19 = vrot.slane %v2524_v16, %v29_v14 }
  0x62   :  { %v2538_v20 = vrot.slane %v2524_v16, %v33_v15 }
  0x63   :  { %2064 = vmatmul.mubr.f32.gmra.mrb[2].mxu0 %v2407_v27  ;;  %v49_v27 = vsub.s32 3, %v2515_v9 }
  0x64   :  { %2066 = vmatprep.mubr.f32.mxu0 %v2409_v28 }
  0x65   :  { %v50_v32 = vrot.slane %v2524_v16, %v49_v27 }
  0x67   :  { %2067 = vmatmul.mubr.f32.gmra.mrb[4].mxu0 %v2432_v39 }
  0x68   :  { %2069 = vmatprep.mubr.f32.mxu0 %v2434_v40 }
  0x6b   :  { %2070 = vmatmul.mubr.f32.gmra.mrb[6].mxu0 %v2458_v57 }
  0x84   :  { %v841_v11 = vpop.permute.xlu1 %840 }
  0x85   :  { %v831_v12 = vpop.permute.xlu0 %830  ;;  %v843_v24 = vmul.f32 %v841_v11, %v2533_v19 }
  0x86   :  { %v833_v25 = vmul.f32 %v831_v12, %v2527_v17 }
  0x89   :  { %v846_v21 = vpop.permute.xlu1 %845 }
  0x8a   :  { %v836_v22 = vpop.permute.xlu0 %835  ;;  %v848_v26 = vmul.f32 %v846_v21, %v2538_v20 }
  0x8b   :  { %v838_v0 = vmul.f32 %v836_v22, %v2530_v18 }
  0x8c   :  { %v855_v28 = vadd.f32 %v848_v26, %v843_v24 }
  0x8d   :  { %v854_v29 = vadd.f32 %v838_v0, %v833_v25 }
  0x8e   :  { %v851_v31 = vpop.permute.xlu1 %850 }
  0x8f   :  { %v853_v33 = vmul.f32 %v851_v31, %v2547_v30  ;;  %v856_v34 = vadd.f32 %v855_v28, %v854_v29 }
  0x91   :  { %v857_v38 = vadd.f32 %v856_v34, %v853_v33 }
 0x132   :  { %v2062_v35 = vpop.f32.mrb[0].mxu0 }
 0x133   :  { %v2156_v36 = vadd.f32 %v2062_v35, %v50_v32  ;;  %v781_v37 = vpop.f32.mrb[1].mxu0 }
 0x134   :  { %v2157_v39 = vadd.f32 %v781_v37, %v50_v32 }
 0x136   :  { %v858_v40 = vadd.f32 %v2157_v39, %v857_v38  ;;  %v2065_v41 = vpop.f32.mrb[2].mxu0 }
 0x137   :  { %v2551_v42 = vadd.f32 %v2065_v41, %v50_v32  ;;  %v793_v43 = vpop.f32.mrb[3].mxu0 }
 0x138   :  { %2298 = vtanh.f32 %v858_v40  ;;  %v2553_v44 = vadd.f32 %v793_v43, %v50_v32 }
 0x13a   :  { %v2068_v45 = vpop.f32.mrb[4].mxu0 }
 0x13b   :  { %v2555_v48 = vadd.f32 %v2068_v45, %v50_v32  ;;  %v805_v49 = vpop.f32.mrb[5].mxu0 }
 0x13c   :  { %v2557_v50 = vadd.f32 %v805_v49, %v50_v32 }
 0x13e   :  { %v2071_v51 = vpop.f32.mrb[6].mxu0 }
 0x13f   :  { %v2559_v52 = vadd.f32 %v2071_v51, %v50_v32  ;;  %v817_v53 = vpop.f32.mrb[7].mxu0 }
 0x140   :  { %v2561_v54 = vadd.f32 %v817_v53, %v50_v32 }
 0x142   :  { %v2299_v55 = vpop.eup %2298 }
 0x143   :  { %867 = vperm.xlu1 %2263, %v2299_v55   ;;  %862 = vperm.xlu0 %2262, %v2299_v55   ;;  %v1096_v56 = vsel %vm1084_vm2, %v2299_v55, 0 }
 0x144   :  { %v2564_v57 = vand.u32 4294901760, %v1096_v56 }
 0x146   :  { %v2567_v58 = vsub.f32 %v1096_v56, %v2564_v57 }
 0x147   :  { %2264 = vset.pattern.permute.xlu1 %v2314_v2  ;;  %2265 = vset.pattern.permute.xlu0 %v2316_v46 }
 0x148   :  { %872 = vperm.xlu1 %2264, %v2299_v55   ;;  %877 = vperm.xlu0 %2265, %v2299_v55   ;;  %v1184_v59 = vand.u32 4294901760, %v2567_v58 }
 0x14a   :  { %v1185_v60 = vsub.f32 %v2567_v58, %v1184_v59 }
 0x14c   :  { %2266 = vset.pattern.permute.xlu1 %v2318_v63  ;;  %v1186_v61 = vand.u32 4294901760, %v1185_v60  ;;  %2268 = vset.pattern.permute.xlu0 %v2317_v47 }
 0x14d   :  { %882 = vperm.xlu1 %2266, %v2299_v55  }
 0x14e   :  { %2074 = vmatprep.mubr.f32.mxu1 %v1186_v61 }
 0x151   :  { %2267 = vset.pattern.permute.xlu1 %v2315_v8 }
 0x1c2   :  { %v868_v7 = vpop.permute.xlu1 %867  ;;  %v863_v11 = vpop.permute.xlu0 %862 }
 0x1c3   :  { %v870_v12 = vmul.f32 %v868_v7, %v2530_v18  ;;  %v865_v10 = vmul.f32 %v863_v11, %v2527_v17 }
 0x1c5   :  { %v886_v22 = vadd.f32 %v870_v12, %v865_v10 }
 0x1c7   :  { %v873_v13 = vpop.permute.xlu1 %872  ;;  %v878_v14 = vpop.permute.xlu0 %877 }
 0x1c8   :  { %v875_v16 = vmul.f32 %v873_v13, %v2533_v19  ;;  %v880_v21 = vmul.f32 %v878_v14, %v2538_v20 }
 0x1ca   :  { %v887_v23 = vadd.f32 %v880_v21, %v875_v16 }
 0x1cc   :  { %v883_v24 = vpop.permute.xlu1 %882  ;;  %v888_v25 = vadd.f32 %v887_v23, %v886_v22 }
 0x1cd   :  { %v885_v26 = vmul.f32 %v883_v24, %v2547_v30 }
 0x1cf   :  { %v889_v0 = vadd.f32 %v888_v25, %v885_v26 }
 0x1d1   :  { %v890_v27 = vadd.f32 %v2156_v36, %v889_v0 }
 0x1d3   :  { %2300 = vtanh.f32 %v890_v27 }
 0x1dd   :  { %v2301_v28 = vpop.eup %2300 }
 0x1de   :  { %899 = vperm.xlu0 %2268, %v2301_v28   ;;  %894 = vperm.xlu1 %2267, %v2301_v28   ;;  %v1098_v29 = vsel %vm1084_vm2, %v2301_v28, 0 }
 0x1df   :  { %v2598_v31 = vand.u32 4294901760, %v1098_v29 }
 0x1e1   :  { %v2601_v32 = vsub.f32 %v1098_v29, %v2598_v31 }
 0x1e2   :  { %2271 = vset.pattern.permute.xlu0 %v2318_v63  ;;  %2269 = vset.pattern.permute.xlu1 %v2314_v2 }
 0x1e3   :  { %914 = vperm.xlu0 %2271, %v2301_v28   ;;  %904 = vperm.xlu1 %2269, %v2301_v28   ;;  %v1194_v33 = vand.u32 4294901760, %v2601_v32 }
 0x1e5   :  { %v1195_v34 = vsub.f32 %v2601_v32, %v1194_v33 }
 0x1e7   :  { %2270 = vset.pattern.permute.xlu1 %v2316_v46  ;;  %v1196_v35 = vand.u32 4294901760, %v1195_v34  ;;  %2274 = vset.pattern.permute.xlu0 %v2314_v2 }
 0x1e8   :  { %909 = vperm.xlu1 %2270, %v2301_v28  }
 0x1e9   :  { %2075 = vmatmul.mubr.f32.vlgmr.msra.gmra.mrb[0].mxu1 %v1196_v35 }
 0x1ec   :  { %2272 = vset.pattern.permute.xlu1 %v2315_v8 }
 0x25d   :  { %v895_v36 = vpop.permute.xlu1 %894  ;;  %v900_v38 = vpop.permute.xlu0 %899 }
 0x25e   :  { %v902_v39 = vmul.f32 %v900_v38, %v2530_v18  ;;  %v897_v40 = vmul.f32 %v895_v36, %v2527_v17 }
 0x260   :  { %v918_v51 = vadd.f32 %v902_v39, %v897_v40 }
 0x262   :  { %v905_v37 = vpop.permute.xlu1 %904  ;;  %v915_v49 = vpop.permute.xlu0 %914 }
 0x263   :  { %v907_v43 = vmul.f32 %v905_v37, %v2533_v19  ;;  %v917_v55 = vmul.f32 %v915_v49, %v2547_v30 }
 0x267   :  { %v910_v41 = vpop.permute.xlu1 %909 }
 0x268   :  { %v912_v45 = vmul.f32 %v910_v41, %v2538_v20 }
 0x26a   :  { %v919_v53 = vadd.f32 %v912_v45, %v907_v43 }
 0x26c   :  { %v920_v56 = vadd.f32 %v919_v53, %v918_v51 }
 0x26e   :  { %v921_v60 = vadd.f32 %v920_v56, %v917_v55 }
 0x270   :  { %v922_v61 = vadd.f32 %v2553_v44, %v921_v60 }
 0x272   :  { %2302 = vtanh.f32 %v922_v61 }
 0x27c   :  { %v2303_v1 = vpop.eup %2302 }
 0x27d   :  { %936 = vperm.xlu0 %2274, %v2303_v1   ;;  %926 = vperm.xlu1 %2272, %v2303_v1   ;;  %v1100_v3 = vsel %vm1084_vm2, %v2303_v1, 0 }
 0x27e   :  { %v2619_v4 = vand.u32 4294901760, %v1100_v3 }
 0x280   :  { %v2622_v7 = vsub.f32 %v1100_v3, %v2619_v4 }
 0x281   :  { %2273 = vset.pattern.permute.xlu1 %v2317_v47  ;;  %2277 = vset.pattern.permute.xlu0 %v2315_v8 }
 0x282   :  { %931 = vperm.xlu1 %2273, %v2303_v1   ;;  %v1204_v11 = vand.u32 4294901760, %v2622_v7 }
 0x284   :  { %v1205_v44 = vsub.f32 %v2622_v7, %v1204_v11 }
 0x286   :  { %2275 = vset.pattern.permute.xlu1 %v2316_v46  ;;  %v1206_v12 = vand.u32 4294901760, %v1205_v44 }
 0x287   :  { %941 = vperm.xlu1 %2275, %v2303_v1  }
 0x288   :  { %2077 = vmatprep.mubr.f32.mxu1 %v1206_v12 }
 0x28b   :  { %2276 = vset.pattern.permute.xlu1 %v2318_v63 }
 0x28c   :  { %946 = vperm.xlu1 %2276, %v2303_v1  }
 0x290   :  { %2278 = vset.pattern.permute.xlu1 %v2317_v47 }
 0x2fc   :  { %v927_v10 = vpop.permute.xlu1 %926  ;;  %v937_v14 = vpop.permute.xlu0 %936 }
 0x2fd   :  { %v939_v22 = vmul.f32 %v937_v14, %v2533_v19  ;;  %v929_v23 = vmul.f32 %v927_v10, %v2527_v17 }
 0x301   :  { %v932_v13 = vpop.permute.xlu1 %931 }
 0x302   :  { %v934_v16 = vmul.f32 %v932_v13, %v2530_v18 }
 0x304   :  { %v950_v25 = vadd.f32 %v934_v16, %v929_v23 }
 0x306   :  { %v942_v21 = vpop.permute.xlu1 %941 }
 0x307   :  { %v944_v24 = vmul.f32 %v942_v21, %v2538_v20 }
 0x309   :  { %v951_v26 = vadd.f32 %v944_v24, %v939_v22 }
 0x30b   :  { %v952_v0 = vadd.f32 %v951_v26, %v950_v25  ;;  %v947_v27 = vpop.permute.xlu1 %946 }
 0x30c   :  { %v949_v28 = vmul.f32 %v947_v27, %v2547_v30 }
 0x30e   :  { %v953_v29 = vadd.f32 %v952_v0, %v949_v28 }
 0x310   :  { %v954_v34 = vadd.f32 %v2551_v42, %v953_v29 }
 0x312   :  { %2304 = vtanh.f32 %v954_v34 }
 0x31c   :  { %v2305_v35 = vpop.eup %2304 }
 0x31d   :  { %963 = vperm.xlu1 %2278, %v2305_v35   ;;  %958 = vperm.xlu0 %2277, %v2305_v35   ;;  %v1102_v36 = vsel %vm1084_vm2, %v2305_v35, 0 }
 0x31e   :  { %v2640_v37 = vand.u32 4294901760, %v1102_v36 }
 0x320   :  { %v2643_v38 = vsub.f32 %v1102_v36, %v2640_v37 }
 0x321   :  { %2279 = vset.pattern.permute.xlu1 %v2314_v2  ;;  %2280 = vset.pattern.permute.xlu0 %v2316_v46 }
 0x322   :  { %968 = vperm.xlu1 %2279, %v2305_v35   ;;  %973 = vperm.xlu0 %2280, %v2305_v35   ;;  %v1214_v39 = vand.u32 4294901760, %v2643_v38 }
 0x324   :  { %v1215_v42 = vsub.f32 %v2643_v38, %v1214_v39 }
 0x326   :  { %2281 = vset.pattern.permute.xlu1 %v2318_v63  ;;  %v1216_v40 = vand.u32 4294901760, %v1215_v42  ;;  %2283 = vset.pattern.permute.xlu0 %v2317_v47 }
 0x327   :  { %978 = vperm.xlu1 %2281, %v2305_v35  }
 0x328   :  { %2078 = vmatmul.mubr.f32.gmra.mrb[2].mxu1 %v1216_v40 }
 0x32b   :  { %2282 = vset.pattern.permute.xlu1 %v2315_v8 }
 0x39c   :  { %v964_v41 = vpop.permute.xlu1 %963  ;;  %v959_v43 = vpop.permute.xlu0 %958 }
 0x39d   :  { %v966_v45 = vmul.f32 %v964_v41, %v2530_v18  ;;  %v961_v49 = vmul.f32 %v959_v43, %v2527_v17 }
 0x39f   :  { %v982_v60 = vadd.f32 %v966_v45, %v961_v49 }
 0x3a1   :  { %v969_v51 = vpop.permute.xlu1 %968  ;;  %v974_v53 = vpop.permute.xlu0 %973 }
 0x3a2   :  { %v971_v55 = vmul.f32 %v969_v51, %v2533_v19  ;;  %v976_v56 = vmul.f32 %v974_v53, %v2538_v20 }
 0x3a4   :  { %v983_v61 = vadd.f32 %v976_v56, %v971_v55 }
 0x3a6   :  { %v979_v1 = vpop.permute.xlu1 %978  ;;  %v984_v3 = vadd.f32 %v983_v61, %v982_v60 }
 0x3a7   :  { %v981_v44 = vmul.f32 %v979_v1, %v2547_v30 }
 0x3a9   :  { %v985_v12 = vadd.f32 %v984_v3, %v981_v44 }
 0x3ab   :  { %v986_v10 = vadd.f32 %v2557_v50, %v985_v12 }
 0x3ad   :  { %2306 = vtanh.f32 %v986_v10 }
 0x3b7   :  { %v2307_v13 = vpop.eup %2306 }
 0x3b8   :  { %995 = vperm.xlu0 %2283, %v2307_v13   ;;  %990 = vperm.xlu1 %2282, %v2307_v13   ;;  %v1104_v14 = vsel %vm1084_vm2, %v2307_v13, 0 }
 0x3b9   :  { %v2661_v16 = vand.u32 4294901760, %v1104_v14 }
 0x3bb   :  { %v2664_v21 = vsub.f32 %v1104_v14, %v2661_v16 }
 0x3bc   :  { %2286 = vset.pattern.permute.xlu0 %v2318_v63  ;;  %2284 = vset.pattern.permute.xlu1 %v2314_v2 }
 0x3bd   :  { %1010 = vperm.xlu0 %2286, %v2307_v13   ;;  %1000 = vperm.xlu1 %2284, %v2307_v13   ;;  %v1224_v22 = vand.u32 4294901760, %v2664_v21 }
 0x3bf   :  { %v1225_v50 = vsub.f32 %v2664_v21, %v1224_v22 }
 0x3c1   :  { %2285 = vset.pattern.permute.xlu1 %v2316_v46  ;;  %v1226_v23 = vand.u32 4294901760, %v1225_v50  ;;  %2289 = vset.pattern.permute.xlu0 %v2314_v2 }
 0x3c2   :  { %1005 = vperm.xlu1 %2285, %v2307_v13  }
 0x3c3   :  { %2080 = vmatprep.mubr.f32.mxu1 %v1226_v23 }
 0x3c6   :  { %2287 = vset.pattern.permute.xlu1 %v2315_v8 }
 0x437   :  { %v991_v24 = vpop.permute.xlu1 %990  ;;  %v996_v26 = vpop.permute.xlu0 %995 }
 0x438   :  { %v998_v0 = vmul.f32 %v996_v26, %v2530_v18  ;;  %v993_v27 = vmul.f32 %v991_v24, %v2527_v17 }
 0x43a   :  { %v1014_v36 = vadd.f32 %v998_v0, %v993_v27 }
 0x43c   :  { %v1001_v25 = vpop.permute.xlu1 %1000  ;;  %v1011_v35 = vpop.permute.xlu0 %1010 }
 0x43d   :  { %v1003_v29 = vmul.f32 %v1001_v25, %v2533_v19  ;;  %v1013_v40 = vmul.f32 %v1011_v35, %v2547_v30 }
 0x441   :  { %v1006_v28 = vpop.permute.xlu1 %1005 }
 0x442   :  { %v1008_v34 = vmul.f32 %v1006_v28, %v2538_v20 }
 0x444   :  { %v1015_v42 = vadd.f32 %v1008_v34, %v1003_v29 }
 0x446   :  { %v1016_v41 = vadd.f32 %v1015_v42, %v1014_v36 }
 0x448   :  { %v1017_v43 = vadd.f32 %v1016_v41, %v1013_v40 }
 0x44a   :  { %v1018_v45 = vadd.f32 %v2555_v48, %v1017_v43 }
 0x44c   :  { %2308 = vtanh.f32 %v1018_v45 }
 0x456   :  { %v2309_v49 = vpop.eup %2308 }
 0x457   :  { %1032 = vperm.xlu0 %2289, %v2309_v49   ;;  %1022 = vperm.xlu1 %2287, %v2309_v49   ;;  %v1106_v51 = vsel %vm1084_vm2, %v2309_v49, 0 }
 0x458   :  { %v2682_v53 = vand.u32 4294901760, %v1106_v51 }
 0x45a   :  { %v2685_v55 = vsub.f32 %v1106_v51, %v2682_v53 }
 0x45b   :  { %2288 = vset.pattern.permute.xlu1 %v2317_v47  ;;  %2292 = vset.pattern.permute.xlu0 %v2315_v8 }
 0x45c   :  { %1027 = vperm.xlu1 %2288, %v2309_v49   ;;  %v1234_v56 = vand.u32 4294901760, %v2685_v55 }
 0x45e   :  { %v1235_v48 = vsub.f32 %v2685_v55, %v1234_v56 }
 0x460   :  { %2290 = vset.pattern.permute.xlu1 %v2316_v46  ;;  %v1236_v60 = vand.u32 4294901760, %v1235_v48 }
 0x461   :  { %1037 = vperm.xlu1 %2290, %v2309_v49  }
 0x462   :  { %2081 = vmatmul.mubr.f32.gmra.mrb[4].mxu1 %v1236_v60 }
 0x465   :  { %2291 = vset.pattern.permute.xlu1 %v2318_v63 }
 0x466   :  { %1042 = vperm.xlu1 %2291, %v2309_v49  }
 0x46a   :  { %2293 = vset.pattern.permute.xlu1 %v2317_v47 }
 0x4d6   :  { %v1023_v61 = vpop.permute.xlu1 %1022  ;;  %v1033_v8 = vpop.permute.xlu0 %1032 }
 0x4d7   :  { %v1035_v12 = vmul.f32 %v1033_v8, %v2533_v19  ;;  %v1025_v10 = vmul.f32 %v1023_v61, %v2527_v17 }
 0x4db   :  { %v1028_v1 = vpop.permute.xlu1 %1027 }
 0x4dc   :  { %v1030_v3 = vmul.f32 %v1028_v1, %v2530_v18 }
 0x4de   :  { %v1046_v14 = vadd.f32 %v1030_v3, %v1025_v10 }
 0x4e0   :  { %v1038_v44 = vpop.permute.xlu1 %1037 }
 0x4e1   :  { %v1040_v13 = vmul.f32 %v1038_v44, %v2538_v20 }
 0x4e3   :  { %v1047_v50 = vadd.f32 %v1040_v13, %v1035_v12 }
 0x4e5   :  { %v1048_v23 = vadd.f32 %v1047_v50, %v1046_v14  ;;  %v1043_v24 = vpop.permute.xlu1 %1042 }
 0x4e6   :  { %v1045_v25 = vmul.f32 %v1043_v24, %v2547_v30 }
 0x4e8   :  { %v1049_v26 = vadd.f32 %v1048_v23, %v1045_v25 }
 0x4ea   :  { %v1050_v47 = vadd.f32 %v2561_v54, %v1049_v26 }
 0x4ec   :  { %2310 = vtanh.f32 %v1050_v47 }
 0x4f6   :  { %v2311_v0 = vpop.eup %2310 }
 0x4f7   :  { %1059 = vperm.xlu1 %2293, %v2311_v0   ;;  %1054 = vperm.xlu0 %2292, %v2311_v0   ;;  %v1108_v27 = vsel %vm1084_vm2, %v2311_v0, 0 }
 0x4f8   :  { %v2703_v28 = vand.u32 4294901760, %v1108_v27 }
 0x4fa   :  { %v2706_v29 = vsub.f32 %v1108_v27, %v2703_v28 }
 0x4fb   :  { %2294 = vset.pattern.permute.xlu1 %v2314_v2  ;;  %2295 = vset.pattern.permute.xlu0 %v2316_v46  ;;  %v1264_v2 = vsub.f32 %v2585_v5, %v2588_v6 }
 0x4fc   :  { %1064 = vperm.xlu1 %2294, %v2311_v0   ;;  %1069 = vperm.xlu0 %2295, %v2311_v0   ;;  %v1244_v34 = vand.u32 4294901760, %v2706_v29 }
 0x4fd   :  { %v1265_v36 = vand.u32 4294901760, %v1264_v2 }
 0x4fe   :  { %v1245_v54 = vsub.f32 %v2706_v29, %v1244_v34 }
 0x4ff   :  { %v1266_v46 = vsub.f32 %v1264_v2, %v1265_v36 }
 0x500   :  { %2296 = vset.pattern.permute.xlu1 %v2318_v63  ;;  %v1246_v35 = vand.u32 4294901760, %v1245_v54  ;;  %2297 = vset.pattern.permute.xlu0 %v2318_v63 }
 0x501   :  { %1074 = vperm.xlu1 %2296, %v2311_v0   ;;  %v1267_v42 = vand.u32 4294901760, %v1266_v46 }
 0x502   :  { %2083 = vmatprep.mubr.f32.mxu1 %v1246_v35 }
 0x503   :  { %2086 = vmatprep.subr.mxu1 %v1267_v42 }
 0x504   :  { %2087 = vmatpush3.msra.mxu1 %v1267_v42 }
 0x505   :  { %2100 = vmatprep.subr.mxu1 %v1264_v2 }
 0x576   :  { %v1060_v40 = vpop.permute.xlu1 %1059  ;;  %v1055_v41 = vpop.permute.xlu0 %1054 }
 0x577   :  { %v1062_v43 = vmul.f32 %v1060_v40, %v2530_v18  ;;  %v1057_v45 = vmul.f32 %v1055_v41, %v2527_v17 }
 0x579   :  { %v1078_v60 = vadd.f32 %v1062_v43, %v1057_v45 }
 0x57b   :  { %v1065_v49 = vpop.permute.xlu1 %1064  ;;  %v1070_v51 = vpop.permute.xlu0 %1069 }
 0x57c   :  { %v1067_v63 = vmul.f32 %v1065_v49, %v2533_v19  ;;  %v1072_v48 = vmul.f32 %v1070_v51, %v2538_v20 }
 0x57e   :  { %v1079_v5 = vadd.f32 %v1072_v48, %v1067_v63 }
 0x580   :  { %v1075_v61 = vpop.permute.xlu1 %1074  ;;  %v1080_v1 = vadd.f32 %v1079_v5, %v1078_v60 }
 0x581   :  { %v1077_v8 = vmul.f32 %v1075_v61, %v2547_v30  ;;  %v1089_v30 = vrot.slane %v2581_v62, %v33_v15 }
 0x583   :  { %v1081_v3 = vadd.f32 %v1080_v1, %v1077_v8 }
 0x585   :  { %v1082_v44 = vadd.f32 %v2559_v52, %v1081_v3 }
 0x587   :  { %2312 = vtanh.f32 %v1082_v44 }
 0x591   :  { %v2313_v12 = vpop.eup %2312 }
 0x592   :  { %1085 = vst.msk [vmem:[%s2813_s4] sm:$0xff] %vm1084_vm2, %v2313_v12  ;;  %v1111_v17 = vsel %vm1084_vm2, %v2313_v12, 0 }
 0x593   :  { %v1252_v18 = vand.u32 4294901760, %v1111_v17 }
 0x595   :  { %v1253_v19 = vsub.f32 %v1111_v17, %v1252_v18 }
 0x597   :  { %v1254_v20 = vand.u32 4294901760, %v1253_v19 }
 0x599   :  { %v1255_v10 = vsub.f32 %v1253_v19, %v1254_v20 }
 0x59b   :  { %v1256_v13 = vand.u32 4294901760, %v1255_v10 }
 0x59d   :  { %2084 = vmatmul.mubr.f32.gmra.mrb[6].mxu1 %v1256_v13 }
 0x59e   :  { %2088 = vmatprep.mubr.f32.mxu1 %v2564_v57 }
 0x5a1   :  { %2089 = vmatmul.mubr.f32.vlgmr.msra.gmra.mrb[0].mxu1 %v2598_v31 }
 0x5a2   :  { %2101 = vmatpush3.msra.mxu1 %v1264_v2  ;;  %2091 = vmatprep.mubr.f32.mxu1 %v2619_v4 }
 0x5a3   :  { %2114 = vmatprep.subr.mxu1 %v2588_v6 }
 0x5a5   :  { %2092 = vmatmul.mubr.f32.gmra.mrb[2].mxu1 %v2640_v37 }
 0x5a6   :  { %2094 = vmatprep.mubr.f32.mxu1 %v2661_v16 }
 0x5a9   :  { %2095 = vmatmul.mubr.f32.gmra.mrb[4].mxu1 %v2682_v53 }
 0x5aa   :  { %2097 = vmatprep.mubr.f32.mxu1 %v2703_v28 }
 0x5ad   :  { %2098 = vmatmul.mubr.f32.gmra.mrb[6].mxu1 %v1252_v18 }
 0x5ae   :  { %2102 = vmatprep.mubr.f32.mxu1 %v2567_v58 }
 0x5b1   :  { %2103 = vmatmul.mubr.f32.vlgmr.msra.gmra.mrb[0].mxu1 %v2601_v32 }
 0x5b2   :  { %2115 = vmatpush3.msra.mxu1 %v2588_v6  ;;  %2105 = vmatprep.mubr.f32.mxu1 %v2622_v7 }
 0x5b3   :  { %2128 = vmatprep.subr.mxu1 %v1265_v36 }
 0x5b5   :  { %2106 = vmatmul.mubr.f32.gmra.mrb[2].mxu1 %v2643_v38 }
 0x5b6   :  { %2108 = vmatprep.mubr.f32.mxu1 %v2664_v21 }
 0x5b9   :  { %2109 = vmatmul.mubr.f32.gmra.mrb[4].mxu1 %v2685_v55 }
 0x5ba   :  { %2111 = vmatprep.mubr.f32.mxu1 %v2706_v29 }
 0x5bd   :  { %2112 = vmatmul.mubr.f32.gmra.mrb[6].mxu1 %v1253_v19 }
 0x5be   :  { %2116 = vmatprep.mubr.f32.mxu1 %v1184_v59 }
 0x5c1   :  { %2117 = vmatmul.mubr.f32.vlgmr.msra.gmra.mrb[0].mxu1 %v1194_v33 }
 0x5c2   :  { %2129 = vmatpush3.msra.mxu1 %v1265_v36  ;;  %2119 = vmatprep.mubr.f32.mxu1 %v1204_v11 }
 0x5c3   :  { %2142 = vmatprep.subr.mxu1 %v2588_v6 }
 0x5c5   :  { %2120 = vmatmul.mubr.f32.gmra.mrb[2].mxu1 %v1214_v39 }
 0x5c6   :  { %2122 = vmatprep.mubr.f32.mxu1 %v1224_v22 }
 0x5c9   :  { %2123 = vmatmul.mubr.f32.gmra.mrb[4].mxu1 %v1234_v56 }
 0x5ca   :  { %2125 = vmatprep.mubr.f32.mxu1 %v1244_v34 }
 0x5cd   :  { %2126 = vmatmul.mubr.f32.gmra.mrb[6].mxu1 %v1254_v20 }
 0x5ce   :  { %2130 = vmatprep.mubr.f32.mxu1 %v2564_v57 }
 0x5d1   :  { %2131 = vmatmul.mubr.f32.vlgmr.msra.gmra.mrb[0].mxu1 %v2598_v31 }
 0x5d2   :  { %2143 = vmatpush3.msra.mxu1 %v2588_v6  ;;  %2133 = vmatprep.mubr.f32.mxu1 %v2619_v4 }
 0x5d5   :  { %2134 = vmatmul.mubr.f32.gmra.mrb[2].mxu1 %v2640_v37 }
 0x5d6   :  { %2136 = vmatprep.mubr.f32.mxu1 %v2661_v16 }
 0x5d9   :  { %2137 = vmatmul.mubr.f32.gmra.mrb[4].mxu1 %v2682_v53 }
 0x5da   :  { %2139 = vmatprep.mubr.f32.mxu1 %v2703_v28 }
 0x5dd   :  { %2140 = vmatmul.mubr.f32.gmra.mrb[6].mxu1 %v1252_v18 }
 0x5de   :  { %2144 = vmatprep.mubr.f32.mxu1 %v2564_v57 }
 0x5e1   :  { %2145 = vmatmul.mubr.f32.vlgmr.msra.gmra.mrb[0].mxu1 %v2598_v31 }
 0x5e2   :  { %2147 = vmatprep.mubr.f32.mxu1 %v2619_v4 }
 0x5e5   :  { %2148 = vmatmul.mubr.f32.gmra.mrb[2].mxu1 %v2640_v37 }
 0x5e6   :  { %2150 = vmatprep.mubr.f32.mxu1 %v2661_v16 }
 0x5e9   :  { %2151 = vmatmul.mubr.f32.gmra.mrb[4].mxu1 %v2682_v53 }
 0x5ea   :  { %2153 = vmatprep.mubr.f32.mxu1 %v2703_v28 }
 0x5ed   :  { %2154 = vmatmul.mubr.f32.gmra.mrb[6].mxu1 %v1252_v18 }
 0x6b4   :  { %v2146_v52 = vpop.f32.mrb[0].mxu1 }
 0x6b5   :  { %v2164_v57 = vadd.f32 %v2146_v52, %v1089_v30  ;;  %v1817_v58 = vpop.f32.mrb[1].mxu1 }
 0x6b6   :  { %v2165_v59 = vadd.f32 %v1817_v58, %v1089_v30 }
 0x6b7   :  { %1865 = vst.msk [vmem:[%s2814_s3 + $0x8] sm:$0xff] %vm1863_vm5, %v2164_v57 }
 0x6b8   :  { %1864 = vst.msk [vmem:[%s2814_s3] sm:$0xff] %vm1863_vm5, %v2165_v59  ;;  %v2149_v6 = vpop.f32.mrb[2].mxu1 }
 0x6b9   :  { %v2166_v31 = vadd.f32 %v2149_v6, %v1089_v30  ;;  %v1829_v9 = vpop.f32.mrb[3].mxu1 }
 0x6ba   :  { %v2167_v32 = vadd.f32 %v1829_v9, %v1089_v30 }
 0x6bb   :  { %1867 = vst.msk [vmem:[%s2814_s3 + $0x18] sm:$0xff] %vm1863_vm5, %v2166_v31 }
 0x6bc   :  { %1866 = vst.msk [vmem:[%s2814_s3 + $0x10] sm:$0xff] %vm1863_vm5, %v2167_v32  ;;  %v2152_v15 = vpop.f32.mrb[4].mxu1 }
 0x6bd   :  { %v2168_v62 = vadd.f32 %v2152_v15, %v1089_v30  ;;  %v1841_v33 = vpop.f32.mrb[5].mxu1 }
 0x6be   :  { %v2169_v4 = vadd.f32 %v1841_v33, %v1089_v30 }
 0x6bf   :  { %1869 = vst.msk [vmem:[%s2814_s3 + $0x28] sm:$0xff] %vm1863_vm5, %v2168_v62 }
 0x6c0   :  { %1868 = vst.msk [vmem:[%s2814_s3 + $0x20] sm:$0xff] %vm1863_vm5, %v2169_v4  ;;  %v2155_v7 = vpop.f32.mrb[6].mxu1 }
 0x6c1   :  { %v2170_v11 = vadd.f32 %v2155_v7, %v1089_v30  ;;  %v1853_v37 = vpop.f32.mrb[7].mxu1 }
 0x6c2   :  { %v2171_v38 = vadd.f32 %v1853_v37, %v1089_v30 }
 0x6c3   :  { %1871 = vst.msk [vmem:[%s2814_s3 + $0x38] sm:$0xff] %vm1863_vm5, %v2170_v11 }
 0x6c4   :  { %1870 = vst.msk [vmem:[%s2814_s3 + $0x30] sm:$0xff] %vm1863_vm5, %v2171_v38 }

</bundles_post_ra>
